<compile_context>
chip_gen: v6e
topology: v6e:2x2x1
jax: 0.10.0
libtpu: 0.0.40
codegen_flags: <defaults>
</compile_context>

<pallas_src>
import functools

import jax
import jax.numpy as jnp
from jax.experimental import pallas as pl
from jax.experimental.pallas import tpu as pltpu


def _cdiv(a, b):
    return -(-a // b)


def _device_kind():
    try:
        return jax.devices()[0].device_kind.lower()
    except Exception:
        return ""


def _choose_tb(batch, d, target_bytes):
    """Row-tile size: ~target_bytes per input tile, multiple of 128 rows."""
    row_cap = max(128, (target_bytes // (d * 4 * 128)) * 128)
    if batch <= row_cap:
        return max(8, ((batch + 7) // 8) * 8)      # single (possibly padded) tile
    return row_cap                                  # multi-tile: multiple of 128


def _my_loss_kernel(x_ref, w_ref, y_ref, out_ref, acc_ref, *,
                    tb, tiles_per_core, num_tiles, batch, lane_natoms):
    c = pl.program_id(0)          # (mega)core-parallel axis
    i = pl.program_id(1)          # sequential reduction axis over row tiles

    @pl.when(i == 0)
    def _init():
        acc_ref[...] = jnp.zeros_like(acc_ref)

    tile_idx = c * tiles_per_core + i
    data_tile = jnp.minimum(tile_idx, num_tiles - 1)   # mirrors the x/y index_map clamp
    row_start = data_tile * tb

    @pl.when(tile_idx < num_tiles)           # skip compute on duplicated (clamped) tiles
    def _compute():
        if lane_natoms:
            # (8, tb) lane-dense, rows identical -> (tb, 1) column via one small
            # XLU transpose (tb*8 elements; XLU has slack in this mem-bound kernel).
            inv_col = jnp.transpose(w_ref[...], (1, 0))[:, 0:1]
        else:
            # Fallback layout: per-tile (tb, 1) column block (previous design).
            inv_col = w_ref[...]

        delta = (x_ref[...] - y_ref[...]) * inv_col     # (tb, D), lane broadcast
        sq = delta * delta

        def _accumulate(vals):
            # (tb, D) -> (tb//8, 8, D) -> sum over row groups: pure VPU adds,
            # no per-step cross-sublane reduce.  Single XLU reduce at the end.
            acc_ref[...] += vals.reshape(tb // 8, 8, vals.shape[-1]).sum(axis=0)

        is_partial = row_start + tb > batch             # only the ragged tail tile

        @pl.when(jnp.logical_not(is_partial))
        def _fast():                                    # interior tiles: no mask
            _accumulate(sq)

        @pl.when(is_partial)
        def _tail():                                    # mask garbage rows (NaN-safe select)
            rows = jax.lax.broadcasted_iota(jnp.int32, sq.shape, 0) + row_start
            _accumulate(jnp.where(rows < batch, sq, 0.0))

    @pl.when(i == tiles_per_core - 1)
    def _finalize():
        col = jnp.sum(acc_ref[...], axis=0, keepdims=True)    # (1, D) sublane reduce
        out_ref[...] = jnp.sum(col, axis=1, keepdims=True)    # (1, 1) per-core partial


def _my_loss_impl(x, natoms, y, *, tb=None, lane_natoms=True):
    x = jnp.asarray(x, jnp.float32)
    y = jnp.asarray(y, jnp.float32)
    inv = 1.0 / jnp.asarray(natoms, jnp.float32).reshape(-1)   # (B,) per-row 1/natoms

    batch, d = x.shape
    assert y.shape == (batch, d) and inv.shape[0] == batch

    kind = _device_kind()
    is_v7 = ("v7" in kind) or ("7x" in kind)

    if lane_natoms and is_v7:
        target_tile_bytes = 8 * 1024 * 1024        # ~8 MiB/input tile (review: v7x)
        vmem_limit = 56 * 1024 * 1024
    else:
        target_tile_bytes = 4 * 1024 * 1024        # proven configuration elsewhere
        vmem_limit = 40 * 1024 * 1024

    if tb is None:
        tb = _choose_tb(batch, d, target_tile_bytes)
    tb = max(8, (tb // 8) * 8)

    num_tiles = _cdiv(batch, tb)
    # 2-way split only where there are 2 TensorCores; a serial loop elsewhere
    # would just add a wasted duplicate-tile fetch.
    n_cores = 2 if (is_v7 and num_tiles >= 2) else 1
    tiles_per_core = _cdiv(num_tiles, n_cores)
    b_pad = n_cores * tiles_per_core * tb

    # Zero weights for padded rows -> padded / duplicated rows contribute 0.
    inv = jnp.pad(inv, (0, b_pad - batch))

    if lane_natoms:
        # Lane-dense slab: contiguous DMA, ~32*tb bytes of VMEM per buffer
        # (vs. 512*tb for a lane-padded column).
        w = jnp.broadcast_to(inv[None, :], (8, b_pad))
        w_spec = pl.BlockSpec((8, tb), lambda c, i: (0, c * tiles_per_core + i))
    else:
        w = inv.reshape(b_pad, 1)
        w_spec = pl.BlockSpec((tb, 1), lambda c, i: (c * tiles_per_core + i, 0))

    # Clamp the data block index so no block is fully out of bounds; duplicated
    # tiles are skipped inside the kernel (and have zero weights anyway).
    data_map = lambda c, i: (jnp.minimum(c * tiles_per_core + i, num_tiles - 1), 0)

    kernel = functools.partial(
        _my_loss_kernel,
        tb=tb,
        tiles_per_core=tiles_per_core,
        num_tiles=num_tiles,
        batch=batch,
        lane_natoms=lane_natoms,
    )

    partials = pl.pallas_call(
        kernel,
        out_shape=jax.ShapeDtypeStruct((n_cores, 1), jnp.float32),
        grid_spec=pltpu.PrefetchScalarGridSpec(
            num_scalar_prefetch=0,
            grid=(n_cores, tiles_per_core),
            in_specs=[
                pl.BlockSpec((tb, d), data_map),   # input tile
                w_spec,                            # 1/natoms (lane-dense or column)
                pl.BlockSpec((tb, d), data_map),   # output (target) tile
            ],
            out_specs=pl.BlockSpec((1, 1), lambda c, i: (c, 0)),   # per-core partial
            scratch_shapes=[pltpu.VMEM((8, d), jnp.float32)],      # grouped accumulator
        ),
        compiler_params=pltpu.CompilerParams(
            dimension_semantics=("parallel", "arbitrary"),
            vmem_limit_bytes=vmem_limit,
        ),
    )(x, w, y)

    # Tiny final reduction + mean normalization in the wrapper.
    return jnp.sum(partials) / (jnp.float32(batch) * jnp.float32(d))


def my_loss(x, natoms, y, *, tb=None):
    """Pallas implementation of MyLoss.forward: mean(((x - y) / natoms) ** 2)."""
    try:
        return _my_loss_impl(x, natoms, y, tb=tb, lane_natoms=True)
    except Exception:
        # Conservative fallback (previously validated column layout) in case the
        # lane-dense natoms path fails to lower on some TPU generation.
        # (Only catches lowering errors when called eagerly, as in the test.)
        return _my_loss_impl(x, natoms, y, tb=tb, lane_natoms=False)


if __name__ == "__main__":
    key = jax.random.PRNGKey(0)
    k1, k2, k3, k4, k5, k6 = jax.random.split(key, 6)

    # Case 1: single tile, unmasked fast path.
    B1, D1 = 128, 128
    x1 = jax.random.normal(k1, (B1, D1), dtype=jnp.float32)
    y1 = jax.random.normal(k2, (B1, D1), dtype=jnp.float32)
    n1 = jax.random.randint(k3, (B1, 1), 1, 9).astype(jnp.float32)
    got1 = my_loss(x1, n1, y1)
    ref1 = jnp.mean(((x1 - y1) / n1) ** 2)

    # Case 2: multiple row tiles + ragged (masked) tail tile.
    B2, D2 = 200, 128
    x2 = jax.random.normal(k4, (B2, D2), dtype=jnp.float32)
    y2 = jax.random.normal(k5, (B2, D2), dtype=jnp.float32)
    n2 = jax.random.randint(k6, (B2, 1), 1, 9).astype(jnp.float32)
    got2 = my_loss(x2, n2, y2, tb=128)
    ref2 = jnp.mean(((x2 - y2) / n2) ** 2)

    # Case 3: explicitly exercise the column-layout fallback kernel.
    got3 = _my_loss_impl(x2, n2, y2, tb=128, lane_natoms=False)

    jax.block_until_ready((got1, got2, got3))

    assert jnp.allclose(got1, ref1, rtol=1e-5, atol=1e-6), (got1, ref1)
    assert jnp.allclose(got2, ref2, rtol=1e-5, atol=1e-6), (got2, ref2)
    assert jnp.allclose(got3, ref2, rtol=1e-5, atol=1e-6), (got3, ref2)

    print("KERNEL_OK")
</pallas_src>

<mosaic_0001>
module attributes {stable_mosaic.version = 11 : i64} {
  func.func @_my_loss_kernel(%arg0: i32, %arg1: i32, %arg2: memref<128x128xf32, #tpu.memory_space<vmem>>, %arg3: memref<8x128xf32, #tpu.memory_space<vmem>>, %arg4: memref<128x128xf32, #tpu.memory_space<vmem>>, %arg5: memref<1x1xf32, #tpu.memory_space<vmem>>, %arg6: memref<8x128xf32, #tpu.memory_space<vmem>>) attributes {dimension_semantics = [#tpu.dimension_semantics<parallel>, #tpu.dimension_semantics<arbitrary>], iteration_bounds = array<i64: 1, 1>, scalar_prefetch = 0 : i64, scratch_operands = 1 : i64, tpu.core_type = #tpu.core_type<tc>, window_params = [{transform_indices = @transform_0, window_bounds = array<i64: 128, 128>}, {transform_indices = @transform_1, window_bounds = array<i64: 8, 128>}, {transform_indices = @transform_2, window_bounds = array<i64: 128, 128>}, {transform_indices = @transform_3, window_bounds = array<i64: 1, 1>}]} {
    %c0_i32 = arith.constant 0 : i32
    %0 = arith.cmpi eq, %arg1, %c0_i32 : i32
    %1 = arith.extui %0 : i1 to i32
    %c0_i32_0 = arith.constant 0 : i32
    %2 = arith.cmpi ne, %1, %c0_i32_0 : i32
    scf.if %2 {
      %cst = arith.constant 0.000000e+00 : f32
      %13 = vector.broadcast %cst : f32 to vector<8x128xf32>
      %c0 = arith.constant 0 : index
      %c0_6 = arith.constant 0 : index
      %14 = vector.load %arg6[%c0, %c0_6] : memref<8x128xf32, #tpu.memory_space<vmem>>, vector<8x128xf32>
      tpu.vector_store %arg6[%c0, %c0_6], %13 {strides = array<i32>} : memref<8x128xf32, #tpu.memory_space<vmem>>, vector<8x128xf32>,
    } else {
    }
    %c1_i32 = arith.constant 1 : i32
    %3 = arith.muli %arg0, %c1_i32 : i32
    %4 = arith.addi %3, %arg1 : i32
    %c0_i32_1 = arith.constant 0 : i32
    %5 = arith.minsi %4, %c0_i32_1 : i32
    %c128_i32 = arith.constant 128 : i32
    %6 = arith.muli %5, %c128_i32 : i32
    %c1_i32_2 = arith.constant 1 : i32
    %7 = arith.cmpi slt, %4, %c1_i32_2 : i32
    %8 = arith.extui %7 : i1 to i32
    %c0_i32_3 = arith.constant 0 : i32
    %9 = arith.cmpi ne, %8, %c0_i32_3 : i32
    scf.if %9 {
      %c0 = arith.constant 0 : index
      %c0_6 = arith.constant 0 : index
      %13 = vector.load %arg3[%c0, %c0_6] : memref<8x128xf32, #tpu.memory_space<vmem>>, vector<8x128xf32>
      %14 = tpu.transpose %13, [1, 0] : vector<8x128xf32> -> vector<128x8xf32>
      %15 = vector.extract_strided_slice %14 {offsets = [0, 0], sizes = [128, 1], strides = [1, 1]} : vector<128x8xf32> to vector<128x1xf32>
      %c0_7 = arith.constant 0 : index
      %c0_8 = arith.constant 0 : index
      %16 = vector.load %arg2[%c0_7, %c0_8] : memref<128x128xf32, #tpu.memory_space<vmem>>, vector<128x128xf32>
      %c0_9 = arith.constant 0 : index
      %c0_10 = arith.constant 0 : index
      %17 = vector.load %arg4[%c0_9, %c0_10] : memref<128x128xf32, #tpu.memory_space<vmem>>, vector<128x128xf32>
      %18 = arith.subf %16, %17 : vector<128x128xf32>
      %19 = vector.broadcast %15 : vector<128x1xf32> to vector<128x128xf32>
      %20 = arith.mulf %18, %19 : vector<128x128xf32>
      %21 = arith.mulf %20, %20 : vector<128x128xf32>
      %c128_i32_11 = arith.constant 128 : i32
      %22 = arith.addi %6, %c128_i32_11 : i32
      %c128_i32_12 = arith.constant 128 : i32
      %23 = arith.cmpi sgt, %22, %c128_i32_12 : i32
      %true = arith.constant true
      %24 = arith.xori %23, %true : i1
      %25 = arith.extui %24 : i1 to i32
      %c0_i32_13 = arith.constant 0 : i32
      %26 = arith.cmpi ne, %25, %c0_i32_13 : i32
      scf.if %26 {
        %c0_15 = arith.constant 0 : index
        %c0_16 = arith.constant 0 : index
        %29 = vector.load %arg6[%c0_15, %c0_16] : memref<8x128xf32, #tpu.memory_space<vmem>>, vector<8x128xf32>
        %30 = vector.shape_cast %21 : vector<128x128xf32> to vector<16x8x128xf32>
        %cst = arith.constant dense<0.000000e+00> : vector<8x128xf32>
        %31 = vector.multi_reduction <add>, %30, %cst [0] : vector<16x8x128xf32> to vector<8x128xf32>
        %32 = arith.addf %29, %31 : vector<8x128xf32>
        %c0_17 = arith.constant 0 : index
        %c0_18 = arith.constant 0 : index
        %33 = vector.load %arg6[%c0_17, %c0_18] : memref<8x128xf32, #tpu.memory_space<vmem>>, vector<8x128xf32>
        tpu.vector_store %arg6[%c0_17, %c0_18], %32 {strides = array<i32>} : memref<8x128xf32, #tpu.memory_space<vmem>>, vector<8x128xf32>,
      } else {
      }
      %27 = arith.extui %23 : i1 to i32
      %c0_i32_14 = arith.constant 0 : i32
      %28 = arith.cmpi ne, %27, %c0_i32_14 : i32
      scf.if %28 {
        %29 = tpu.iota {dimensions = array<i32: 0>} : vector<128x128xi32>
        %30 = vector.broadcast %6 : i32 to vector<128x128xi32>
        %31 = arith.addi %29, %30 : vector<128x128xi32>
        %c128_i32_15 = arith.constant 128 : i32
        %32 = vector.broadcast %c128_i32_15 : i32 to vector<128x128xi32>
        %33 = arith.cmpi slt, %31, %32 : vector<128x128xi32>
        %cst = arith.constant 0.000000e+00 : f32
        %34 = vector.broadcast %cst : f32 to vector<128x128xf32>
        %35 = arith.select %33, %21, %34 : vector<128x128xi1>, vector<128x128xf32>
        %c0_16 = arith.constant 0 : index
        %c0_17 = arith.constant 0 : index
        %36 = vector.load %arg6[%c0_16, %c0_17] : memref<8x128xf32, #tpu.memory_space<vmem>>, vector<8x128xf32>
        %37 = vector.shape_cast %35 : vector<128x128xf32> to vector<16x8x128xf32>
        %cst_18 = arith.constant dense<0.000000e+00> : vector<8x128xf32>
        %38 = vector.multi_reduction <add>, %37, %cst_18 [0] : vector<16x8x128xf32> to vector<8x128xf32>
        %39 = arith.addf %36, %38 : vector<8x128xf32>
        %c0_19 = arith.constant 0 : index
        %c0_20 = arith.constant 0 : index
        %40 = vector.load %arg6[%c0_19, %c0_20] : memref<8x128xf32, #tpu.memory_space<vmem>>, vector<8x128xf32>
        tpu.vector_store %arg6[%c0_19, %c0_20], %39 {strides = array<i32>} : memref<8x128xf32, #tpu.memory_space<vmem>>, vector<8x128xf32>,
      } else {
      }
    } else {
    }
    %c0_i32_4 = arith.constant 0 : i32
    %10 = arith.cmpi eq, %arg1, %c0_i32_4 : i32
    %11 = arith.extui %10 : i1 to i32
    %c0_i32_5 = arith.constant 0 : i32
    %12 = arith.cmpi ne, %11, %c0_i32_5 : i32
    scf.if %12 {
      %c0 = arith.constant 0 : index
      %c0_6 = arith.constant 0 : index
      %13 = vector.load %arg6[%c0, %c0_6] : memref<8x128xf32, #tpu.memory_space<vmem>>, vector<8x128xf32>
      %cst = arith.constant dense<0.000000e+00> : vector<128xf32>
      %14 = vector.multi_reduction <add>, %13, %cst [0] : vector<8x128xf32> to vector<128xf32>
      %15 = vector.shape_cast %14 : vector<128xf32> to vector<1x128xf32>
      %cst_7 = arith.constant dense<0.000000e+00> : vector<1xf32>
      %16 = vector.multi_reduction <add>, %15, %cst_7 [1] : vector<1x128xf32> to vector<1xf32>
      %17 = vector.shape_cast %16 : vector<1xf32> to vector<1x1xf32>
      %c0_8 = arith.constant 0 : index
      %c0_9 = arith.constant 0 : index
      %18 = vector.load %arg5[%c0_8, %c0_9] : memref<1x1xf32, #tpu.memory_space<vmem>>, vector<1x1xf32>
      tpu.vector_store %arg5[%c0_8, %c0_9], %17 {strides = array<i32>} : memref<1x1xf32, #tpu.memory_space<vmem>>, vector<1x1xf32>,
    } else {
    }
    return
  }
  func.func @transform_0(%arg0: i32, %arg1: i32) -> (i32, i32) {
    %c1_i32 = arith.constant 1 : i32
    %0 = arith.muli %arg0, %c1_i32 : i32
    %1 = arith.addi %0, %arg1 : i32
    %c0_i32 = arith.constant 0 : i32
    %2 = arith.minsi %1, %c0_i32 : i32
    %c0_i32_0 = arith.constant 0 : i32
    %c0_i32_1 = arith.constant 0 : i32
    return %2, %c0_i32_0 : i32, i32
  }
  func.func @transform_1(%arg0: i32, %arg1: i32) -> (i32, i32) {
    %c1_i32 = arith.constant 1 : i32
    %0 = arith.muli %arg0, %c1_i32 : i32
    %1 = arith.addi %0, %arg1 : i32
    %c0_i32 = arith.constant 0 : i32
    %c0_i32_0 = arith.constant 0 : i32
    return %c0_i32, %1 : i32, i32
  }
  func.func @transform_2(%arg0: i32, %arg1: i32) -> (i32, i32) {
    %c1_i32 = arith.constant 1 : i32
    %0 = arith.muli %arg0, %c1_i32 : i32
    %1 = arith.addi %0, %arg1 : i32
    %c0_i32 = arith.constant 0 : i32
    %2 = arith.minsi %1, %c0_i32 : i32
    %c0_i32_0 = arith.constant 0 : i32
    %c0_i32_1 = arith.constant 0 : i32
    return %2, %c0_i32_0 : i32, i32
  }
  func.func @transform_3(%arg0: i32, %arg1: i32) -> (i32, i32) {
    %c0_i32 = arith.constant 0 : i32
    %c0_i32_0 = arith.constant 0 : i32
    return %arg0, %c0_i32 : i32, i32
  }
}

module attributes {stable_mosaic.version = 11 : i64} {
  func.func @_my_loss_kernel(%arg0: i32, %arg1: i32, %arg2: memref<128x128xf32, #tpu.memory_space<vmem>>, %arg3: memref<128x1xf32, #tpu.memory_space<vmem>>, %arg4: memref<128x128xf32, #tpu.memory_space<vmem>>, %arg5: memref<1x1xf32, #tpu.memory_space<vmem>>, %arg6: memref<8x128xf32, #tpu.memory_space<vmem>>) attributes {dimension_semantics = [#tpu.dimension_semantics<parallel>, #tpu.dimension_semantics<arbitrary>], iteration_bounds = array<i64: 1, 1>, scalar_prefetch = 0 : i64, scratch_operands = 1 : i64, tpu.core_type = #tpu.core_type<tc>, window_params = [{transform_indices = @transform_0, window_bounds = array<i64: 128, 128>}, {transform_indices = @transform_1, window_bounds = array<i64: 128, 1>}, {transform_indices = @transform_2, window_bounds = array<i64: 128, 128>}, {transform_indices = @transform_3, window_bounds = array<i64: 1, 1>}]} {
    %c0_i32 = arith.constant 0 : i32
    %0 = arith.cmpi eq, %arg1, %c0_i32 : i32
    %1 = arith.extui %0 : i1 to i32
    %c0_i32_0 = arith.constant 0 : i32
    %2 = arith.cmpi ne, %1, %c0_i32_0 : i32
    scf.if %2 {
      %cst = arith.constant 0.000000e+00 : f32
      %13 = vector.broadcast %cst : f32 to vector<8x128xf32>
      %c0 = arith.constant 0 : index
      %c0_6 = arith.constant 0 : index
      %14 = vector.load %arg6[%c0, %c0_6] : memref<8x128xf32, #tpu.memory_space<vmem>>, vector<8x128xf32>
      tpu.vector_store %arg6[%c0, %c0_6], %13 {strides = array<i32>} : memref<8x128xf32, #tpu.memory_space<vmem>>, vector<8x128xf32>,
    } else {
    }
    %c1_i32 = arith.constant 1 : i32
    %3 = arith.muli %arg0, %c1_i32 : i32
    %4 = arith.addi %3, %arg1 : i32
    %c0_i32_1 = arith.constant 0 : i32
    %5 = arith.minsi %4, %c0_i32_1 : i32
    %c128_i32 = arith.constant 128 : i32
    %6 = arith.muli %5, %c128_i32 : i32
    %c1_i32_2 = arith.constant 1 : i32
    %7 = arith.cmpi slt, %4, %c1_i32_2 : i32
    %8 = arith.extui %7 : i1 to i32
    %c0_i32_3 = arith.constant 0 : i32
    %9 = arith.cmpi ne, %8, %c0_i32_3 : i32
    scf.if %9 {
      %c0 = arith.constant 0 : index
      %c0_6 = arith.constant 0 : index
      %13 = vector.load %arg3[%c0, %c0_6] : memref<128x1xf32, #tpu.memory_space<vmem>>, vector<128x1xf32>
      %c0_7 = arith.constant 0 : index
      %c0_8 = arith.constant 0 : index
      %14 = vector.load %arg2[%c0_7, %c0_8] : memref<128x128xf32, #tpu.memory_space<vmem>>, vector<128x128xf32>
      %c0_9 = arith.constant 0 : index
      %c0_10 = arith.constant 0 : index
      %15 = vector.load %arg4[%c0_9, %c0_10] : memref<128x128xf32, #tpu.memory_space<vmem>>, vector<128x128xf32>
      %16 = arith.subf %14, %15 : vector<128x128xf32>
      %17 = vector.broadcast %13 : vector<128x1xf32> to vector<128x128xf32>
      %18 = arith.mulf %16, %17 : vector<128x128xf32>
      %19 = arith.mulf %18, %18 : vector<128x128xf32>
      %c128_i32_11 = arith.constant 128 : i32
      %20 = arith.addi %6, %c128_i32_11 : i32
      %c128_i32_12 = arith.constant 128 : i32
      %21 = arith.cmpi sgt, %20, %c128_i32_12 : i32
      %true = arith.constant true
      %22 = arith.xori %21, %true : i1
      %23 = arith.extui %22 : i1 to i32
      %c0_i32_13 = arith.constant 0 : i32
      %24 = arith.cmpi ne, %23, %c0_i32_13 : i32
      scf.if %24 {
        %c0_15 = arith.constant 0 : index
        %c0_16 = arith.constant 0 : index
        %27 = vector.load %arg6[%c0_15, %c0_16] : memref<8x128xf32, #tpu.memory_space<vmem>>, vector<8x128xf32>
        %28 = vector.shape_cast %19 : vector<128x128xf32> to vector<16x8x128xf32>
        %cst = arith.constant dense<0.000000e+00> : vector<8x128xf32>
        %29 = vector.multi_reduction <add>, %28, %cst [0] : vector<16x8x128xf32> to vector<8x128xf32>
        %30 = arith.addf %27, %29 : vector<8x128xf32>
        %c0_17 = arith.constant 0 : index
        %c0_18 = arith.constant 0 : index
        %31 = vector.load %arg6[%c0_17, %c0_18] : memref<8x128xf32, #tpu.memory_space<vmem>>, vector<8x128xf32>
        tpu.vector_store %arg6[%c0_17, %c0_18], %30 {strides = array<i32>} : memref<8x128xf32, #tpu.memory_space<vmem>>, vector<8x128xf32>,
      } else {
      }
      %25 = arith.extui %21 : i1 to i32
      %c0_i32_14 = arith.constant 0 : i32
      %26 = arith.cmpi ne, %25, %c0_i32_14 : i32
      scf.if %26 {
        %27 = tpu.iota {dimensions = array<i32: 0>} : vector<128x128xi32>
        %28 = vector.broadcast %6 : i32 to vector<128x128xi32>
        %29 = arith.addi %27, %28 : vector<128x128xi32>
        %c128_i32_15 = arith.constant 128 : i32
        %30 = vector.broadcast %c128_i32_15 : i32 to vector<128x128xi32>
        %31 = arith.cmpi slt, %29, %30 : vector<128x128xi32>
        %cst = arith.constant 0.000000e+00 : f32
        %32 = vector.broadcast %cst : f32 to vector<128x128xf32>
        %33 = arith.select %31, %19, %32 : vector<128x128xi1>, vector<128x128xf32>
        %c0_16 = arith.constant 0 : index
        %c0_17 = arith.constant 0 : index
        %34 = vector.load %arg6[%c0_16, %c0_17] : memref<8x128xf32, #tpu.memory_space<vmem>>, vector<8x128xf32>
        %35 = vector.shape_cast %33 : vector<128x128xf32> to vector<16x8x128xf32>
        %cst_18 = arith.constant dense<0.000000e+00> : vector<8x128xf32>
        %36 = vector.multi_reduction <add>, %35, %cst_18 [0] : vector<16x8x128xf32> to vector<8x128xf32>
        %37 = arith.addf %34, %36 : vector<8x128xf32>
        %c0_19 = arith.constant 0 : index
        %c0_20 = arith.constant 0 : index
        %38 = vector.load %arg6[%c0_19, %c0_20] : memref<8x128xf32, #tpu.memory_space<vmem>>, vector<8x128xf32>
        tpu.vector_store %arg6[%c0_19, %c0_20], %37 {strides = array<i32>} : memref<8x128xf32, #tpu.memory_space<vmem>>, vector<8x128xf32>,
      } else {
      }
    } else {
    }
    %c0_i32_4 = arith.constant 0 : i32
    %10 = arith.cmpi eq, %arg1, %c0_i32_4 : i32
    %11 = arith.extui %10 : i1 to i32
    %c0_i32_5 = arith.constant 0 : i32
    %12 = arith.cmpi ne, %11, %c0_i32_5 : i32
    scf.if %12 {
      %c0 = arith.constant 0 : index
      %c0_6 = arith.constant 0 : index
      %13 = vector.load %arg6[%c0, %c0_6] : memref<8x128xf32, #tpu.memory_space<vmem>>, vector<8x128xf32>
      %cst = arith.constant dense<0.000000e+00> : vector<128xf32>
      %14 = vector.multi_reduction <add>, %13, %cst [0] : vector<8x128xf32> to vector<128xf32>
      %15 = vector.shape_cast %14 : vector<128xf32> to vector<1x128xf32>
      %cst_7 = arith.constant dense<0.000000e+00> : vector<1xf32>
      %16 = vector.multi_reduction <add>, %15, %cst_7 [1] : vector<1x128xf32> to vector<1xf32>
      %17 = vector.shape_cast %16 : vector<1xf32> to vector<1x1xf32>
      %c0_8 = arith.constant 0 : index
      %c0_9 = arith.constant 0 : index
      %18 = vector.load %arg5[%c0_8, %c0_9] : memref<1x1xf32, #tpu.memory_space<vmem>>, vector<1x1xf32>
      tpu.vector_store %arg5[%c0_8, %c0_9], %17 {strides = array<i32>} : memref<1x1xf32, #tpu.memory_space<vmem>>, vector<1x1xf32>,
    } else {
    }
    return
  }
  func.func @transform_0(%arg0: i32, %arg1: i32) -> (i32, i32) {
    %c1_i32 = arith.constant 1 : i32
    %0 = arith.muli %arg0, %c1_i32 : i32
    %1 = arith.addi %0, %arg1 : i32
    %c0_i32 = arith.constant 0 : i32
    %2 = arith.minsi %1, %c0_i32 : i32
    %c0_i32_0 = arith.constant 0 : i32
    %c0_i32_1 = arith.constant 0 : i32
    return %2, %c0_i32_0 : i32, i32
  }
  func.func @transform_1(%arg0: i32, %arg1: i32) -> (i32, i32) {
    %c1_i32 = arith.constant 1 : i32
    %0 = arith.muli %arg0, %c1_i32 : i32
    %1 = arith.addi %0, %arg1 : i32
    %c0_i32 = arith.constant 0 : i32
    %c0_i32_0 = arith.constant 0 : i32
    return %1, %c0_i32 : i32, i32
  }
  func.func @transform_2(%arg0: i32, %arg1: i32) -> (i32, i32) {
    %c1_i32 = arith.constant 1 : i32
    %0 = arith.muli %arg0, %c1_i32 : i32
    %1 = arith.addi %0, %arg1 : i32
    %c0_i32 = arith.constant 0 : i32
    %2 = arith.minsi %1, %c0_i32 : i32
    %c0_i32_0 = arith.constant 0 : i32
    %c0_i32_1 = arith.constant 0 : i32
    return %2, %c0_i32_0 : i32, i32
  }
  func.func @transform_3(%arg0: i32, %arg1: i32) -> (i32, i32) {
    %c0_i32 = arith.constant 0 : i32
    %c0_i32_0 = arith.constant 0 : i32
    return %arg0, %c0_i32 : i32, i32
  }
}

</mosaic_0001>

<bundles_post_ra>
// kernel: tpu_custom_call.1
= control target key start
LH: loop header
LB: loop body
LE: loop exit
PB: predicated region body
PF: predicated region fallthrough
CT: control target
= control target key end

     0   :  { %8 = vsyncpa [#allocation4], 0  ;;  %s564_s0 = inlined_call_operand.hbm [shape: f32[128,128], index: 0, kind: input, shape index: {}]   ;;  %s565_s1 = inlined_call_operand.hbm [shape: f32[8,128], index: 1, kind: input, shape index: {}]   ;;  %s566_s2 = inlined_call_operand.hbm [shape: f32[128,128], index: 2, kind: input, shape index: {}]   ;;  %s567_s3 = inlined_call_operand.hbm [shape: f32[1,1], index: 3, kind: output, shape index: {}]  }
   0x1   :  { %9 = vsyncpa [#allocation7], 0 }
   0x2   :  { %10 = vsyncpa [#allocation5], 0  ;;  %s525_s12 = smov [#allocation6]   ;;  %s526_s14 = smov [#allocation3]  }
   0x3   :  { %s38_s13 = sshll.u32 %s525_s12, 4  ;;  %s22_s15 = sshll.u32 %s526_s14, 4  ;;  %s39_s13 = int_to_ptr.vmem [resolvable:$true] %s38_s13  ;;  %s23_s15 = int_to_ptr.vmem [resolvable:$true] %s22_s15 }
   0x4   :  { %s447_s16 = scalar_lea.vmem %s39_s13, 128  ;;  %p452_p1 = scmp.lt.s32.totalorder %s39_s13, %s39_s13 }
   0x5   :  { %p448_p0 = scmp.ne.s32.totalorder %s39_s13, %s447_s16  ;;  %p453_p2 = scmp.lt.s32.totalorder %s447_s16, %s447_s16 }
   0x7   :  { %p454_p3 = por %p453_p2, %p452_p1 }
   0x9   :  { %p455_p4 = pnand %p454_p3, %p448_p0 }
   0xb   :  { %458 = shalt.err (!%p455_p4)
}
   0xc   :  { %41 = dma.hbm_to_vmem [thread:$0]  %s565_s1, 128, %s39_s13, [#allocation7]  }
   0xd   :  { %s467_s19 = scalar_lea.vmem %s23_s15, 2048  ;;  %p472_p6 = scmp.lt.s32.totalorder %s23_s15, %s23_s15 }
   0xe   :  { %p468_p5 = scmp.ne.s32.totalorder %s23_s15, %s467_s19  ;;  %p473_p7 = scmp.lt.s32.totalorder %s467_s19, %s467_s19 }
  0x10   :  { %p474_p8 = por %p473_p7, %p472_p6 }
  0x12   :  { %p475_p9 = pnand %p474_p8, %p468_p5 }
  0x14   :  { %478 = shalt.err (!%p475_p9)
}
  0x15   :  { %s527_s20 = smov 128   ;;  %s528_s21 = smov 8  }
  0x16   :  { %28 = dma.hbm_to_vmem [thread:$0]  %s564_s0, 2048, %s23_s15, [#allocation4], %s527_s20, %s527_s20, %s528_s21  }
  0x17   :  { %s529_s24 = smov [#allocation8]  }
  0x18   :  { %s53_s25 = sshll.u32 %s529_s24, 4  ;;  %s54_s25 = int_to_ptr.vmem [resolvable:$true] %s53_s25 }
  0x19   :  { %s487_s26 = scalar_lea.vmem %s54_s25, 2048  ;;  %p492_p11 = scmp.lt.s32.totalorder %s54_s25, %s54_s25 }
  0x1a   :  { %p488_p10 = scmp.ne.s32.totalorder %s54_s25, %s487_s26  ;;  %p493_p12 = scmp.lt.s32.totalorder %s487_s26, %s487_s26 }
  0x1c   :  { %p494_p13 = por %p493_p12, %p492_p11 }
  0x1e   :  { %p495_p0 = pnand %p494_p13, %p488_p10 }
  0x20   :  { %498 = shalt.err (!%p495_p0)
}
  0x21   :  { %59 = dma.hbm_to_vmem [thread:$0]  %s566_s2, 2048, %s54_s25, [#allocation7], %s527_s20, %s527_s20, %s528_s21  }
  0x22   :  { %519 = dma.done.wait [#allocation4], 2048  }
  0x23   :  { %520 = vsyncadd [#allocation4], 4294965248 }
  0x24   :  { %521 = dma.done.wait [#allocation7], 2176  }
  0x25   :  { %522 = vsyncadd [#allocation7], 4294965120  ;;  %v530_v0 = vmov 0   ;;  %v91_v1 = vld [vmem:[#allocation6] sm:$0xff]  ;;  %v125_v23 = vld [vmem:[#allocation3 + $0x8] sm:$0xff]  ;;  %s531_s0 = smov [#allocation9]  }
  0x26   :  { %438 = vset.pattern.permute.xlu1 %v530_v0  ;;  %92 = vxpose.xlu0.b32.start.end [1/1] (short) %v91_v1, 128  ;;  %v141_v24 = vld [vmem:[#allocation8 + $0x8] sm:$0xff]  ;;  %v124_v25 = vld [vmem:[#allocation3] sm:$0xff]  ;;  %v140_v26 = vld [vmem:[#allocation8] sm:$0xff]  ;;  %s415_s2 = sshll.u32 %s531_s0, 4  ;;  %vm407_vm0 = vcmask 0   ;;  %s416_s2 = int_to_ptr.vmem [resolvable:$true] %s415_s2 }
  0x27   :  { %v126_v27 = vld [vmem:[#allocation3 + $0x10] sm:$0xff]  ;;  %v142_v28 = vld [vmem:[#allocation8 + $0x10] sm:$0xff]  ;;  %v157_v30 = vsub.f32 %v125_v23, %v141_v24  ;;  %v143_v32 = vld [vmem:[#allocation8 + $0x18] sm:$0xff]  ;;  %v156_v33 = vsub.f32 %v124_v25, %v140_v26  ;;  %s499_s28 = scalar_lea.vmem %s416_s2, 16  ;;  %s503_s29 = scalar_lea.vmem %s416_s2, 32 }
  0x28   :  { %v127_v31 = vld [vmem:[#allocation3 + $0x18] sm:$0xff]  ;;  %v158_v34 = vsub.f32 %v126_v27, %v142_v28  ;;  %v128_v36 = vld [vmem:[#allocation3 + $0x20] sm:$0xff]  ;;  %v144_v37 = vld [vmem:[#allocation8 + $0x20] sm:$0xff]  ;;  %p500_p1 = scmp.ne.s32.totalorder %s416_s2, %s499_s28  ;;  %p504_p2 = scmp.lt.s32.totalorder %s416_s2, %s416_s2 }
  0x29   :  { %v159_v40 = vsub.f32 %v127_v31, %v143_v32  ;;  %v129_v41 = vld [vmem:[#allocation3 + $0x28] sm:$0xff]  ;;  %v145_v42 = vld [vmem:[#allocation8 + $0x28] sm:$0xff]  ;;  %v160_v45 = vsub.f32 %v128_v36, %v144_v37  ;;  %v146_v47 = vld [vmem:[#allocation8 + $0x30] sm:$0xff]  ;;  %p505_p3 = scmp.lt.s32.totalorder %s503_s29, %s499_s28 }
  0x2a   :  { %v130_v46 = vld [vmem:[#allocation3 + $0x30] sm:$0xff]  ;;  %v161_v51 = vsub.f32 %v129_v41, %v145_v42  ;;  %v131_v52 = vld [vmem:[#allocation3 + $0x38] sm:$0xff]  ;;  %v147_v53 = vld [vmem:[#allocation8 + $0x38] sm:$0xff] }
  0x2b   :  { %v162_v57 = vsub.f32 %v130_v46, %v146_v47  ;;  %v132_v58 = vld [vmem:[#allocation3 + $0x40] sm:$0xff]  ;;  %v148_v59 = vld [vmem:[#allocation8 + $0x40] sm:$0xff]  ;;  %v153_v28 = vld [vmem:[#allocation8 + $0x68] sm:$0xff]  ;;  %p506_p4 = por %p505_p3, %p504_p2 }
  0x2c   :  { %v133_v1 = vld [vmem:[#allocation3 + $0x48] sm:$0xff] }
  0x2d   :  { %v137_v27 = vld [vmem:[#allocation3 + $0x68] sm:$0xff]  ;;  %p507_p5 = pnand %p506_p4, %p500_p1 }
  0x2e   :  { %v169_v37 = vsub.f32 %v137_v27, %v153_v28 }
  0x4f   :  { %437 = vset.pattern.permute.xlu0 %v530_v0  ;;  %v163_v0 = vsub.f32 %v131_v52, %v147_v53 }
  0xa2   :  { %v108_v2 = vpop.trf.xlu0 }
  0xa3   :  { %174 = vperm.xlu0 %437, %v108_v2   ;;  %v149_v2 = vld [vmem:[#allocation8 + $0x48] sm:$0xff] }
  0xa6   :  { %v109_v3 = vpop.trf.xlu0 }
  0xa7   :  { %179 = vperm.xlu1 %438, %v109_v3  }
  0xaa   :  { %v110_v4 = vpop.trf.xlu0 }
  0xab   :  { %184 = vperm.xlu1 %438, %v110_v4  }
  0xae   :  { %v111_v5 = vpop.trf.xlu0 }
  0xaf   :  { %189 = vperm.xlu1 %438, %v111_v5  }
  0xb2   :  { %v112_v6 = vpop.trf.xlu0 }
  0xb3   :  { %194 = vperm.xlu1 %438, %v112_v6   ;;  %v164_v6 = vsub.f32 %v132_v58, %v148_v59 }
  0xb6   :  { %v113_v7 = vpop.trf.xlu0 }
  0xb7   :  { %199 = vperm.xlu1 %438, %v113_v7   ;;  %v134_v7 = vld [vmem:[#allocation3 + $0x50] sm:$0xff] }
  0xba   :  { %v114_v8 = vpop.trf.xlu0 }
  0xbb   :  { %204 = vperm.xlu1 %438, %v114_v8   ;;  %v150_v8 = vld [vmem:[#allocation8 + $0x50] sm:$0xff] }
  0xbe   :  { %v115_v9 = vpop.trf.xlu0 }
  0xbf   :  { %209 = vperm.xlu1 %438, %v115_v9  }
  0xc2   :  { %v116_v10 = vpop.trf.xlu0 }
  0xc3   :  { %214 = vperm.xlu1 %438, %v116_v10  }
  0xc6   :  { %v117_v11 = vpop.trf.xlu0 }
  0xc7   :  { %219 = vperm.xlu1 %438, %v117_v11  }
  0xca   :  { %v118_v12 = vpop.trf.xlu0 }
  0xcb   :  { %224 = vperm.xlu1 %438, %v118_v12  }
  0xce   :  { %v119_v13 = vpop.trf.xlu0 }
  0xcf   :  { %229 = vperm.xlu1 %438, %v119_v13   ;;  %v165_v13 = vsub.f32 %v133_v1, %v149_v2 }
  0xd2   :  { %v120_v14 = vpop.trf.xlu0 }
  0xd3   :  { %234 = vperm.xlu1 %438, %v120_v14   ;;  %v135_v14 = vld [vmem:[#allocation3 + $0x58] sm:$0xff] }
  0xd6   :  { %v121_v15 = vpop.trf.xlu0 }
  0xd7   :  { %239 = vperm.xlu1 %438, %v121_v15   ;;  %v151_v15 = vld [vmem:[#allocation8 + $0x58] sm:$0xff] }
  0xd8   :  { %v167_v26 = vsub.f32 %v135_v14, %v151_v15 }
  0xda   :  { %v122_v16 = vpop.trf.xlu0 }
  0xdb   :  { %244 = vperm.xlu1 %438, %v122_v16  }
  0xde   :  { %v123_v17 = vpop.trf.xlu0 }
  0xdf   :  { %249 = vperm.xlu1 %438, %v123_v17  }
 0x11e   :  { %v175_v35 = vpop.permute.xlu0 %174 }
 0x11f   :  { %v252_v43 = vmul.f32 %v175_v35, %v156_v33 }
 0x121   :  { %v268_v54 = vmul.f32 %v252_v43, %v252_v43 }
 0x122   :  { %v180_v18 = vpop.permute.xlu1 %179 }
 0x123   :  { %v253_v39 = vmul.f32 %v180_v18, %v157_v30 }
 0x125   :  { %v269_v49 = vmul.f32 %v253_v39, %v253_v39  ;;  %v154_v39 = vld [vmem:[#allocation8 + $0x70] sm:$0xff] }
 0x126   :  { %v185_v19 = vpop.permute.xlu1 %184 }
 0x127   :  { %v254_v44 = vmul.f32 %v185_v19, %v158_v34  ;;  %v291_v61 = vadd.f32 %v269_v49, %v268_v54  ;;  %v166_v19 = vsub.f32 %v134_v7, %v150_v8  ;;  %v155_v49 = vld [vmem:[#allocation8 + $0x78] sm:$0xff] }
 0x129   :  { %v270_v55 = vmul.f32 %v254_v44, %v254_v44 }
 0x12a   :  { %v190_v20 = vpop.permute.xlu1 %189 }
 0x12b   :  { %v255_v50 = vmul.f32 %v190_v20, %v159_v40  ;;  %v292_v3 = vadd.f32 %v291_v61, %v270_v55 }
 0x12d   :  { %v271_v62 = vmul.f32 %v255_v50, %v255_v50 }
 0x12e   :  { %v195_v21 = vpop.permute.xlu1 %194 }
 0x12f   :  { %v256_v56 = vmul.f32 %v195_v21, %v160_v45  ;;  %v293_v10 = vadd.f32 %v292_v3, %v271_v62  ;;  %v136_v21 = vld [vmem:[#allocation3 + $0x60] sm:$0xff] }
 0x131   :  { %v272_v4 = vmul.f32 %v256_v56, %v256_v56 }
 0x132   :  { %v200_v22 = vpop.permute.xlu1 %199 }
 0x133   :  { %v257_v63 = vmul.f32 %v200_v22, %v161_v51  ;;  %v294_v16 = vadd.f32 %v293_v10, %v272_v4  ;;  %v152_v22 = vld [vmem:[#allocation8 + $0x60] sm:$0xff] }
 0x134   :  { %v168_v32 = vsub.f32 %v136_v21, %v152_v22 }
 0x135   :  { %v273_v11 = vmul.f32 %v257_v63, %v257_v63 }
 0x136   :  { %v205_v29 = vpop.permute.xlu1 %204 }
 0x137   :  { %v258_v5 = vmul.f32 %v205_v29, %v162_v57  ;;  %v295_v23 = vadd.f32 %v294_v16, %v273_v11 }
 0x139   :  { %v274_v17 = vmul.f32 %v258_v5, %v258_v5 }
 0x13a   :  { %v210_v38 = vpop.permute.xlu1 %209 }
 0x13b   :  { %v259_v12 = vmul.f32 %v210_v38, %v163_v0  ;;  %v296_v29 = vadd.f32 %v295_v23, %v274_v17  ;;  %v138_v38 = vld [vmem:[#allocation3 + $0x70] sm:$0xff] }
 0x13c   :  { %v170_v47 = vsub.f32 %v138_v38, %v154_v39 }
 0x13d   :  { %v275_v24 = vmul.f32 %v259_v12, %v259_v12 }
 0x13e   :  { %v215_v48 = vpop.permute.xlu1 %214 }
 0x13f   :  { %v260_v18 = vmul.f32 %v215_v48, %v164_v6  ;;  %v297_v34 = vadd.f32 %v296_v29, %v275_v24  ;;  %v139_v48 = vld [vmem:[#allocation3 + $0x78] sm:$0xff] }
 0x140   :  { %v171_v56 = vsub.f32 %v139_v48, %v155_v49 }
 0x141   :  { %v276_v30 = vmul.f32 %v260_v18, %v260_v18 }
 0x142   :  { %v220_v60 = vpop.permute.xlu1 %219 }
 0x143   :  { %v261_v25 = vmul.f32 %v220_v60, %v165_v13  ;;  %v298_v40 = vadd.f32 %v297_v34, %v276_v30 }
 0x145   :  { %v277_v35 = vmul.f32 %v261_v25, %v261_v25 }
 0x146   :  { %v225_v9 = vpop.permute.xlu1 %224 }
 0x147   :  { %v262_v31 = vmul.f32 %v225_v9, %v166_v19  ;;  %v299_v44 = vadd.f32 %v298_v40, %v277_v35 }
 0x149   :  { %v278_v41 = vmul.f32 %v262_v31, %v262_v31 }
 0x14a   :  { %v230_v20 = vpop.permute.xlu1 %229 }
 0x14b   :  { %v263_v36 = vmul.f32 %v230_v20, %v167_v26  ;;  %v300_v50 = vadd.f32 %v299_v44, %v278_v41 }
 0x14d   :  { %v279_v45 = vmul.f32 %v263_v36, %v263_v36 }
 0x14e   :  { %v235_v33 = vpop.permute.xlu1 %234 }
 0x14f   :  { %v264_v42 = vmul.f32 %v235_v33, %v168_v32  ;;  %v301_v53 = vadd.f32 %v300_v50, %v279_v45 }
 0x151   :  { %v280_v51 = vmul.f32 %v264_v42, %v264_v42 }
 0x152   :  { %v240_v43 = vpop.permute.xlu1 %239 }
 0x153   :  { %v265_v46 = vmul.f32 %v240_v43, %v169_v37  ;;  %v302_v57 = vadd.f32 %v301_v53, %v280_v51 }
 0x155   :  { %v281_v54 = vmul.f32 %v265_v46, %v265_v46 }
 0x156   :  { %v245_v52 = vpop.permute.xlu1 %244 }
 0x157   :  { %v266_v55 = vmul.f32 %v245_v52, %v170_v47  ;;  %v303_v60 = vadd.f32 %v302_v57, %v281_v54 }
 0x159   :  { %v282_v58 = vmul.f32 %v266_v55, %v266_v55 }
 0x15a   :  { %v250_v59 = vpop.permute.xlu1 %249 }
 0x15b   :  { %v267_v61 = vmul.f32 %v250_v59, %v171_v56  ;;  %v304_v62 = vadd.f32 %v303_v60, %v282_v58 }
 0x15d   :  { %v283_v63 = vmul.f32 %v267_v61, %v267_v61 }
 0x15f   :  { %v305_v0 = vadd.f32 %v304_v62, %v283_v63 }
 0x161   :  { %v399_v1 = vrot.slane %v305_v0, 4 }
 0x163   :  { %v400_v2 = vadd.f32 %v399_v1, %v305_v0 }
 0x165   :  { %v401_v3 = vrot.slane %v400_v2, 2 }
 0x167   :  { %v402_v4 = vadd.f32 %v401_v3, %v400_v2 }
 0x169   :  { %v403_v5 = vrot.slane %v402_v4, 1 }
 0x16b   :  { %v404_v6 = vadd.f32 %v403_v5, %v402_v4 }
 0x16d   :  { %405 = vadd.xlane.f32.xlu1 %v404_v6 }
 0x1f6   :  { %v406_v7 = vpop.xlane.xlu1 %405 }
 0x1f7   :  { %408 = vst.msk [vmem:[#allocation9] sm:$0x1] %vm407_vm0, %v406_v7 }
 0x1f8   :  { %510 = shalt.err (!%p507_p5)
}
 0x1f9   :  { %418 = dma.vmem_to_hbm [thread:$0]  %s416_s2, 16, %s567_s3, [#allocation5]  }
 0x1fa   :  { %523 = dma.done.wait [#allocation5], 16  }
 0x1fb   :  { %524 = vsyncadd [#allocation5], 4294967280 }
 0x1fc   :  { %422 = vsyncpa [#allocation4], 1 }
 0x1fd   :  { %423 = vsyncpa [#allocation7], 1 }
 0x1fe   :  { %424 = vsyncpa [#allocation5], 1 }

// kernel: tpu_custom_call.1
= control target key start
LH: loop header
LB: loop body
LE: loop exit
PB: predicated region body
PF: predicated region fallthrough
CT: control target
= control target key end

     0   :  { %8 = vsyncpa [#allocation4], 0  ;;  %s614_s0 = inlined_call_operand.vmem [shape: f32[128,128], index: 0, kind: input, shape index: {}]   ;;  %s615_s1 = inlined_call_operand.vmem [shape: f32[128,1], index: 1, kind: input, shape index: {}]   ;;  %s616_s2 = inlined_call_operand.hbm [shape: f32[128,128], index: 2, kind: input, shape index: {}]   ;;  %s617_s3 = inlined_call_operand.hbm [shape: f32[1,1], index: 3, kind: output, shape index: {}]  }
   0x1   :  { %9 = vsyncpa [#allocation5], 0  ;;  %s487_s12 = smov [#allocation3]  }
   0x2   :  { %s45_s13 = sshll.u32 %s487_s12, 4  ;;  %s46_s13 = int_to_ptr.vmem [resolvable:$true] %s45_s13 }
   0x3   :  { %s451_s14 = scalar_lea.vmem %s46_s13, 2048  ;;  %p456_p1 = scmp.lt.s32.totalorder %s46_s13, %s46_s13 }
   0x4   :  { %p452_p0 = scmp.ne.s32.totalorder %s46_s13, %s451_s14  ;;  %p457_p2 = scmp.lt.s32.totalorder %s451_s14, %s451_s14 }
   0x6   :  { %p458_p3 = por %p457_p2, %p456_p1 }
   0x8   :  { %p459_p4 = pnand %p458_p3, %p452_p0 }
   0xa   :  { %462 = shalt.err (!%p459_p4)
}
   0xb   :  { %s488_s15 = smov 128   ;;  %s489_s16 = smov 8  }
   0xc   :  { %51 = dma.hbm_to_vmem [thread:$0]  %s616_s2, 2048, %s46_s13, [#allocation4], %s488_s15, %s488_s15, %s489_s16  }
   0xd   :  { %483 = dma.done.wait [#allocation4], 2048  }
   0xe   :  { %484 = vsyncadd [#allocation4], 4294965248  ;;  %v490_v0 = vmov 0   ;;  %v108_v1 = vld [vmem:[%s615_s1 + $0x10] sm:$0xff]  ;;  %v106_v2 = vld [vmem:[%s615_s1] sm:$0xff]  ;;  %vm405_vm0 = vcmask 0  }
   0xf   :  { %442 = vset.pattern.permute.xlu1 %v490_v0  ;;  %441 = vset.pattern.permute.xlu0 %v490_v0  ;;  %v109_v3 = vld [vmem:[%s615_s1 + $0x18] sm:$0xff]  ;;  %v107_v4 = vld [vmem:[%s615_s1 + $0x8] sm:$0xff]  ;;  %v110_v6 = vld [vmem:[%s615_s1 + $0x20] sm:$0xff] }
  0x10   :  { %182 = vperm.xlu1 %442, %v108_v1   ;;  %172 = vperm.xlu0 %441, %v106_v2   ;;  %v111_v5 = vld [vmem:[%s615_s1 + $0x28] sm:$0xff]  ;;  %v113_v7 = vld [vmem:[%s615_s1 + $0x38] sm:$0xff]  ;;  %v112_v8 = vld [vmem:[%s615_s1 + $0x30] sm:$0xff] }
  0x11   :  { %v115_v9 = vld [vmem:[%s615_s1 + $0x48] sm:$0xff]  ;;  %v114_v10 = vld [vmem:[%s615_s1 + $0x40] sm:$0xff]  ;;  %v117_v11 = vld [vmem:[%s615_s1 + $0x58] sm:$0xff] }
  0x12   :  { %v116_v12 = vld [vmem:[%s615_s1 + $0x50] sm:$0xff]  ;;  %v119_v13 = vld [vmem:[%s615_s1 + $0x68] sm:$0xff]  ;;  %v118_v14 = vld [vmem:[%s615_s1 + $0x60] sm:$0xff] }
  0x13   :  { %v121_v15 = vld [vmem:[%s615_s1 + $0x78] sm:$0xff]  ;;  %v120_v16 = vld [vmem:[%s615_s1 + $0x70] sm:$0xff]  ;;  %v122_v17 = vld [vmem:[%s614_s0] sm:$0xff] }
  0x14   :  { %187 = vperm.xlu1 %442, %v109_v3   ;;  %177 = vperm.xlu0 %441, %v107_v4   ;;  %v138_v18 = vld [vmem:[#allocation3] sm:$0xff]  ;;  %v124_v19 = vld [vmem:[%s614_s0 + $0x10] sm:$0xff]  ;;  %v123_v21 = vld [vmem:[%s614_s0 + $0x8] sm:$0xff] }
  0x15   :  { %v140_v20 = vld [vmem:[#allocation3 + $0x10] sm:$0xff]  ;;  %v139_v22 = vld [vmem:[#allocation3 + $0x8] sm:$0xff]  ;;  %v154_v23 = vsub.f32 %v122_v17, %v138_v18  ;;  %v125_v26 = vld [vmem:[%s614_s0 + $0x18] sm:$0xff] }
  0x16   :  { %v141_v27 = vld [vmem:[#allocation3 + $0x18] sm:$0xff]  ;;  %v156_v28 = vsub.f32 %v124_v19, %v140_v20  ;;  %v155_v29 = vsub.f32 %v123_v21, %v139_v22  ;;  %v126_v30 = vld [vmem:[%s614_s0 + $0x20] sm:$0xff]  ;;  %v127_v36 = vld [vmem:[%s614_s0 + $0x28] sm:$0xff] }
  0x17   :  { %v142_v31 = vld [vmem:[#allocation3 + $0x20] sm:$0xff]  ;;  %v157_v33 = vsub.f32 %v125_v26, %v141_v27  ;;  %v143_v37 = vld [vmem:[#allocation3 + $0x28] sm:$0xff]  ;;  %v128_v41 = vld [vmem:[%s614_s0 + $0x30] sm:$0xff] }
  0x18   :  { %197 = vperm.xlu1 %442, %v111_v5   ;;  %192 = vperm.xlu0 %441, %v110_v6   ;;  %v158_v40 = vsub.f32 %v126_v30, %v142_v31  ;;  %v144_v42 = vld [vmem:[#allocation3 + $0x30] sm:$0xff]  ;;  %v159_v46 = vsub.f32 %v127_v36, %v143_v37  ;;  %v129_v49 = vld [vmem:[%s614_s0 + $0x38] sm:$0xff]  ;;  %v130_v55 = vld [vmem:[%s614_s0 + $0x40] sm:$0xff] }
  0x19   :  { %v145_v50 = vld [vmem:[#allocation3 + $0x38] sm:$0xff]  ;;  %v160_v54 = vsub.f32 %v128_v41, %v144_v42  ;;  %v146_v56 = vld [vmem:[#allocation3 + $0x40] sm:$0xff]  ;;  %v131_v63 = vld [vmem:[%s614_s0 + $0x48] sm:$0xff] }
  0x1a   :  { %v161_v60 = vsub.f32 %v129_v49, %v145_v50  ;;  %v147_v0 = vld [vmem:[#allocation3 + $0x48] sm:$0xff]  ;;  %v162_v4 = vsub.f32 %v130_v55, %v146_v56  ;;  %v132_v5 = vld [vmem:[%s614_s0 + $0x50] sm:$0xff]  ;;  %v134_v19 = vld [vmem:[%s614_s0 + $0x60] sm:$0xff] }
  0x1b   :  { %v148_v6 = vld [vmem:[#allocation3 + $0x50] sm:$0xff]  ;;  %v150_v20 = vld [vmem:[#allocation3 + $0x60] sm:$0xff]  ;;  %v135_v27 = vld [vmem:[%s614_s0 + $0x68] sm:$0xff] }
  0x1c   :  { %207 = vperm.xlu1 %442, %v113_v7   ;;  %202 = vperm.xlu0 %441, %v112_v8   ;;  %v164_v18 = vsub.f32 %v132_v5, %v148_v6  ;;  %v137_v41 = vld [vmem:[%s614_s0 + $0x78] sm:$0xff] }
  0x1d   :  { %v153_v42 = vld [vmem:[#allocation3 + $0x78] sm:$0xff] }
  0x1e   :  { %v169_v50 = vsub.f32 %v137_v41, %v153_v42 }
  0x20   :  { %217 = vperm.xlu1 %442, %v115_v9   ;;  %212 = vperm.xlu0 %441, %v114_v10   ;;  %v163_v10 = vsub.f32 %v131_v63, %v147_v0 }
  0x24   :  { %227 = vperm.xlu1 %442, %v117_v11   ;;  %222 = vperm.xlu0 %441, %v116_v12  }
  0x28   :  { %237 = vperm.xlu1 %442, %v119_v13   ;;  %232 = vperm.xlu0 %441, %v118_v14   ;;  %v133_v13 = vld [vmem:[%s614_s0 + $0x58] sm:$0xff] }
  0x29   :  { %v149_v14 = vld [vmem:[#allocation3 + $0x58] sm:$0xff] }
  0x2c   :  { %247 = vperm.xlu1 %442, %v121_v15   ;;  %242 = vperm.xlu0 %441, %v120_v16  }
  0x8b   :  { %v183_v24 = vpop.permute.xlu1 %182  ;;  %v173_v25 = vpop.permute.xlu0 %172 }
  0x8c   :  { %v250_v32 = vmul.f32 %v173_v25, %v154_v23  ;;  %v252_v38 = vmul.f32 %v183_v24, %v156_v28  ;;  %v165_v24 = vsub.f32 %v133_v13, %v149_v14  ;;  %v151_v28 = vld [vmem:[#allocation3 + $0x68] sm:$0xff] }
  0x8e   :  { %v266_v43 = vmul.f32 %v250_v32, %v250_v32  ;;  %v268_v51 = vmul.f32 %v252_v38, %v252_v38  ;;  %v166_v32 = vsub.f32 %v134_v19, %v150_v20  ;;  %v167_v38 = vsub.f32 %v135_v27, %v151_v28 }
  0x8f   :  { %v188_v34 = vpop.permute.xlu1 %187  ;;  %v178_v35 = vpop.permute.xlu0 %177 }
  0x90   :  { %v251_v39 = vmul.f32 %v178_v35, %v155_v29  ;;  %v253_v44 = vmul.f32 %v188_v34, %v157_v33  ;;  %v136_v33 = vld [vmem:[%s614_s0 + $0x70] sm:$0xff]  ;;  %s491_s0 = smov [#allocation6]  }
  0x91   :  { %v152_v34 = vld [vmem:[#allocation3 + $0x70] sm:$0xff]  ;;  %s413_s25 = sshll.u32 %s491_s0, 4  ;;  %s414_s25 = int_to_ptr.vmem [resolvable:$true] %s413_s25 }
  0x92   :  { %v267_v45 = vmul.f32 %v251_v39, %v251_v39  ;;  %v269_v57 = vmul.f32 %v253_v44, %v253_v44  ;;  %s463_s26 = scalar_lea.vmem %s414_s25, 16  ;;  %s467_s27 = scalar_lea.vmem %s414_s25, 32 }
  0x93   :  { %v198_v47 = vpop.permute.xlu1 %197  ;;  %v193_v48 = vpop.permute.xlu0 %192  ;;  %p464_p5 = scmp.ne.s32.totalorder %s414_s25, %s463_s26  ;;  %p468_p6 = scmp.lt.s32.totalorder %s414_s25, %s414_s25 }
  0x94   :  { %v289_v52 = vadd.f32 %v267_v45, %v266_v43  ;;  %v254_v53 = vmul.f32 %v193_v48, %v158_v40  ;;  %v255_v59 = vmul.f32 %v198_v47, %v159_v46  ;;  %v168_v46 = vsub.f32 %v136_v33, %v152_v34  ;;  %p469_p7 = scmp.lt.s32.totalorder %s467_s27, %s463_s26 }
  0x96   :  { %v290_v58 = vadd.f32 %v289_v52, %v268_v51  ;;  %v270_v2 = vmul.f32 %v254_v53, %v254_v53  ;;  %v271_v7 = vmul.f32 %v255_v59, %v255_v59  ;;  %p470_p8 = por %p469_p7, %p468_p6 }
  0x97   :  { %v208_v61 = vpop.permute.xlu1 %207  ;;  %v203_v62 = vpop.permute.xlu0 %202 }
  0x98   :  { %v291_v1 = vadd.f32 %v290_v58, %v269_v57  ;;  %v256_v3 = vmul.f32 %v203_v62, %v160_v54  ;;  %v257_v9 = vmul.f32 %v208_v61, %v161_v60  ;;  %p471_p9 = pnand %p470_p8, %p464_p5 }
  0x9a   :  { %v292_v8 = vadd.f32 %v291_v1, %v270_v2  ;;  %v272_v16 = vmul.f32 %v256_v3, %v256_v3  ;;  %v273_v21 = vmul.f32 %v257_v9, %v257_v9 }
  0x9b   :  { %v218_v11 = vpop.permute.xlu1 %217  ;;  %v213_v12 = vpop.permute.xlu0 %212 }
  0x9c   :  { %v293_v15 = vadd.f32 %v292_v8, %v271_v7  ;;  %v258_v17 = vmul.f32 %v213_v12, %v162_v4  ;;  %v259_v23 = vmul.f32 %v218_v11, %v163_v10 }
  0x9e   :  { %v294_v22 = vadd.f32 %v293_v15, %v272_v16  ;;  %v274_v30 = vmul.f32 %v258_v17, %v258_v17  ;;  %v275_v35 = vmul.f32 %v259_v23, %v259_v23 }
  0x9f   :  { %v228_v25 = vpop.permute.xlu1 %227  ;;  %v223_v26 = vpop.permute.xlu0 %222 }
  0xa0   :  { %v295_v29 = vadd.f32 %v294_v22, %v273_v21  ;;  %v260_v31 = vmul.f32 %v223_v26, %v164_v18  ;;  %v261_v37 = vmul.f32 %v228_v25, %v165_v24 }
  0xa2   :  { %v296_v36 = vadd.f32 %v295_v29, %v274_v30  ;;  %v276_v44 = vmul.f32 %v260_v31, %v260_v31  ;;  %v277_v47 = vmul.f32 %v261_v37, %v261_v37 }
  0xa3   :  { %v238_v39 = vpop.permute.xlu1 %237  ;;  %v233_v40 = vpop.permute.xlu0 %232 }
  0xa4   :  { %v297_v43 = vadd.f32 %v296_v36, %v275_v35  ;;  %v262_v45 = vmul.f32 %v233_v40, %v166_v32  ;;  %v263_v49 = vmul.f32 %v238_v39, %v167_v38 }
  0xa6   :  { %v298_v48 = vadd.f32 %v297_v43, %v276_v44  ;;  %v278_v54 = vmul.f32 %v262_v45, %v262_v45  ;;  %v279_v56 = vmul.f32 %v263_v49, %v263_v49 }
  0xa7   :  { %v248_v51 = vpop.permute.xlu1 %247  ;;  %v243_v52 = vpop.permute.xlu0 %242 }
  0xa8   :  { %v299_v53 = vadd.f32 %v298_v48, %v277_v47  ;;  %v264_v55 = vmul.f32 %v243_v52, %v168_v46  ;;  %v265_v58 = vmul.f32 %v248_v51, %v169_v50 }
  0xaa   :  { %v300_v57 = vadd.f32 %v299_v53, %v278_v54  ;;  %v280_v60 = vmul.f32 %v264_v55, %v264_v55  ;;  %v281_v61 = vmul.f32 %v265_v58, %v265_v58 }
  0xac   :  { %v301_v59 = vadd.f32 %v300_v57, %v279_v56 }
  0xae   :  { %v302_v62 = vadd.f32 %v301_v59, %v280_v60 }
  0xb0   :  { %v303_v63 = vadd.f32 %v302_v62, %v281_v61 }
  0xb2   :  { %v397_v0 = vrot.slane %v303_v63, 4 }
  0xb4   :  { %v398_v1 = vadd.f32 %v397_v0, %v303_v63 }
  0xb6   :  { %v399_v2 = vrot.slane %v398_v1, 2 }
  0xb8   :  { %v400_v3 = vadd.f32 %v399_v2, %v398_v1 }
  0xba   :  { %v401_v4 = vrot.slane %v400_v3, 1 }
  0xbc   :  { %v402_v5 = vadd.f32 %v401_v4, %v400_v3 }
  0xbe   :  { %403 = vadd.xlane.f32.xlu0 %v402_v5 }
 0x147   :  { %v404_v6 = vpop.xlane.xlu0 %403 }
 0x148   :  { %406 = vst.msk [vmem:[#allocation6] sm:$0x1] %vm405_vm0, %v404_v6 }
 0x149   :  { %474 = shalt.err (!%p471_p9)
}
 0x14a   :  { %416 = dma.vmem_to_hbm [thread:$0]  %s414_s25, 16, %s617_s3, [#allocation5]  }
 0x14b   :  { %485 = dma.done.wait [#allocation5], 16  }
 0x14c   :  { %486 = vsyncadd [#allocation5], 4294967280 }
 0x14d   :  { %420 = vsyncpa [#allocation4], 1 }
 0x14e   :  { %421 = vsyncpa [#allocation5], 1 }

</bundles_post_ra>
